<compile_context>
chip_gen: v6e
topology: v6e:2x2x1
jax: 0.10.0
libtpu: 0.0.40
codegen_flags: <defaults>
</compile_context>

<pallas_src>
import jax
import jax.numpy as jnp
from jax.experimental import pallas as pl
from jax.experimental.pallas import tpu as pltpu


def _round_up(n, m):
    return ((n + m - 1) // m) * m


def classifier_kernel(x_ref, w1_ref, b1_ref, w2_ref, b2_ref, wc_ref, bc_ref,
                      probs_ref, latent_ref):
    # x arrives in its original dtype; cast to bf16 in-kernel so the wrapper
    # never does a standalone cast pass over x in HBM.
    x = x_ref[...].astype(jnp.bfloat16)

    # fc1 + relu: bf16 MXU matmul, f32 accumulation.
    h1 = jnp.dot(x, w1_ref[...], preferred_element_type=jnp.float32) + b1_ref[...]
    h1 = jnp.maximum(h1, 0.0)

    # fc2 + relu -> latent (kept f32 for the output).
    lat = jnp.dot(h1.astype(jnp.bfloat16), w2_ref[...],
                  preferred_element_type=jnp.float32) + b2_ref[...]
    lat = jnp.maximum(lat, 0.0)

    # fcc over the lane-dense padded head; padded bias = -1e30 (f32) so padded
    # softmax columns are exactly 0.
    logits = jnp.dot(lat.astype(jnp.bfloat16), wc_ref[...],
                     preferred_element_type=jnp.float32) + bc_ref[...]
    m = jnp.max(logits, axis=1, keepdims=True)              # XLU
    e = jnp.exp(logits - m)                                  # EUP
    # Row-sum on the (nearly idle) MXU instead of a second XLU reduce.
    ones = jnp.ones((e.shape[1], 1), jnp.float32)
    denom = jnp.dot(e, ones, preferred_element_type=jnp.float32)
    probs = e * pl.reciprocal(denom)                         # exact; EUP has slack

    probs_ref[...] = probs.astype(probs_ref.dtype)
    latent_ref[...] = lat.astype(latent_ref.dtype)


def classifier_forward(x, w1, b1, w2, b2, wc, bc, *, block_b=2048):
    """x: (B, 1024), any float dtype. Weights are (in, out); biases (1, out).

    Returns (probs (B, num_classes) bf16, latent (B, 64) f32).
    """
    B, in_dim = x.shape
    hid1 = w1.shape[1]
    hid2 = w2.shape[1]
    num_classes = wc.shape[1]
    c_pad = _round_up(num_classes, 128)   # lane-dense padded class dim

    # Batch tile: multiple of 16 rows (bf16 sublane packing), at least 2 grid
    # steps when the batch allows it (v7x megacore), capped at block_b.
    # block_b=2048 keeps double-buffered f32 x tiles + outputs ~20 MB, well
    # inside the 48 MiB limit (and v7x's 64 MiB per-core VMEM).
    tb = _round_up(max(1, -(-B // 2)), 16)
    tb = max(16, min(tb, block_b))
    b_pad = _round_up(B, tb)
    if b_pad != B:
        x = jnp.pad(x, ((0, b_pad - B), (0, 0)))

    # Weights are tiny (one-time cast); the head is padded to c_pad columns.
    w1_bf = w1.astype(jnp.bfloat16)
    w2_bf = w2.astype(jnp.bfloat16)
    wc_p = jnp.zeros((hid2, c_pad), jnp.bfloat16).at[:, :num_classes].set(
        wc.astype(jnp.bfloat16))
    bc_p = jnp.full((1, c_pad), -1e30, jnp.float32).at[:, :num_classes].set(
        bc.astype(jnp.float32).reshape(1, num_classes))
    b1_f = b1.astype(jnp.float32).reshape(1, hid1)
    b2_f = b2.astype(jnp.float32).reshape(1, hid2)

    batch_spec = lambda cols: pl.BlockSpec((tb, cols), lambda i: (i, 0))
    # Constant index_map -> VMEM-resident across grid steps; single-buffered
    # (no point double-buffering data that never changes).
    const_spec = lambda shape: pl.BlockSpec(shape, lambda i: (0, 0),
                                            pipeline_mode=pl.Buffered(1))

    flops = 2 * b_pad * (in_dim * hid1 + hid1 * hid2 + hid2 * c_pad + c_pad)
    bytes_accessed = (
        b_pad * in_dim * x.dtype.itemsize
        + (w1_bf.size + w2_bf.size + wc_p.size) * 2
        + (b1_f.size + b2_f.size + bc_p.size) * 4
        + b_pad * c_pad * 2        # probs out (bf16)
        + b_pad * hid2 * 4)        # latent out (f32)

    probs_pad, latent_pad = pl.pallas_call(
        classifier_kernel,
        out_shape=(
            jax.ShapeDtypeStruct((b_pad, c_pad), jnp.bfloat16),
            jax.ShapeDtypeStruct((b_pad, hid2), jnp.float32),
        ),
        grid=(b_pad // tb,),
        in_specs=[
            batch_spec(in_dim),           # x         (TB, 1024), blocked on batch
            const_spec((in_dim, hid1)),   # w1        resident across grid steps
            const_spec((1, hid1)),        # b1
            const_spec((hid1, hid2)),     # w2
            const_spec((1, hid2)),        # b2
            const_spec((hid2, c_pad)),    # wc (lane-dense padded)
            const_spec((1, c_pad)),       # bc (padded with -1e30)
        ],
        out_specs=(
            batch_spec(c_pad),            # probs (padded classes, bf16)
            batch_spec(hid2),             # latent (f32)
        ),
        compiler_params=pltpu.CompilerParams(
            dimension_semantics=("parallel",),   # megacore sharding on v7x
            vmem_limit_bytes=48 << 20,           # under v7x's 64 MiB per-core VMEM
        ),
        cost_estimate=pl.CostEstimate(
            flops=flops,
            transcendentals=b_pad * c_pad,
            bytes_accessed=bytes_accessed,
        ),
    )(x, w1_bf, b1_f, w2_bf, b2_f, wc_p, bc_p)

    # Avoid touching the padded block unless we actually have to slice.
    probs = probs_pad
    if b_pad != B or c_pad != num_classes:
        probs = probs[:B, :num_classes]
    latent = latent_pad[:B] if b_pad != B else latent_pad
    return probs, latent


def init_params(key, num_classes):
    """Deterministic PyTorch-Linear-style init (uniform +-1/sqrt(fan_in))."""
    def linear(k, fan_in, fan_out):
        kw, kb = jax.random.split(k)
        bound = 1.0 / jnp.sqrt(fan_in)
        # stored as (in, out) so the kernel does x @ W
        w = jax.random.uniform(kw, (fan_in, fan_out), jnp.float32, -bound, bound)
        b = jax.random.uniform(kb, (1, fan_out), jnp.float32, -bound, bound)
        return w, b

    k1, k2, k3 = jax.random.split(key, 3)
    w1, b1 = linear(k1, 1024, 128)
    w2, b2 = linear(k2, 128, 64)
    wc, bc = linear(k3, 64, num_classes)
    return w1, b1, w2, b2, wc, bc


if __name__ == "__main__":
    num_classes = 10
    batch = 8

    key = jax.random.PRNGKey(0)
    kx, kp = jax.random.split(key)
    x = jax.random.normal(kx, (batch, 1024), jnp.float32)
    params = init_params(kp, num_classes)

    probs, latent = jax.jit(classifier_forward)(x, *params)
    jax.block_until_ready((probs, latent))

    # Pure-JAX f32 reference (kernel uses bf16 matmuls with f32 accumulation
    # and emits bf16 probabilities, so tolerances are relaxed accordingly).
    w1, b1, w2, b2, wc, bc = params
    h1_ref = jnp.maximum(x @ w1 + b1, 0.0)
    lat_ref = jnp.maximum(h1_ref @ w2 + b2, 0.0)
    probs_ref = jax.nn.softmax(lat_ref @ wc + bc, axis=1)

    probs_f32 = probs.astype(jnp.float32)
    assert probs.shape == (batch, num_classes) and latent.shape == (batch, 64)
    assert bool(jnp.all(jnp.isfinite(probs_f32))) and bool(jnp.all(jnp.isfinite(latent)))
    assert jnp.allclose(jnp.sum(probs_f32, axis=1), 1.0, atol=5e-3)
    assert jnp.allclose(latent, lat_ref, atol=3e-2, rtol=3e-2)
    assert jnp.allclose(probs_f32, probs_ref, atol=2e-2)

    print("KERNEL_OK")
</pallas_src>

<mosaic_0001>
module attributes {stable_mosaic.version = 11 : i64} {
  func.func @classifier_kernel(%arg0: i32, %arg1: memref<16x1024xf32, #tpu.memory_space<vmem>>, %arg2: memref<1024x128xbf16, #tpu.memory_space<vmem>>, %arg3: memref<1x128xf32, #tpu.memory_space<vmem>>, %arg4: memref<128x64xbf16, #tpu.memory_space<vmem>>, %arg5: memref<1x64xf32, #tpu.memory_space<vmem>>, %arg6: memref<64x128xbf16, #tpu.memory_space<vmem>>, %arg7: memref<1x128xf32, #tpu.memory_space<vmem>>, %arg8: memref<16x128xbf16, #tpu.memory_space<vmem>>, %arg9: memref<16x64xf32, #tpu.memory_space<vmem>>) attributes {dimension_semantics = [#tpu.dimension_semantics<parallel>], iteration_bounds = array<i64: 1>, scalar_prefetch = 0 : i64, scratch_operands = 0 : i64, tpu.core_type = #tpu.core_type<tc>, window_params = [{transform_indices = @transform_0, window_bounds = array<i64: 16, 1024>}, {pipeline_mode = #tpu.pipeline_mode<synchronous>, transform_indices = @transform_1, window_bounds = array<i64: 1024, 128>}, {pipeline_mode = #tpu.pipeline_mode<synchronous>, transform_indices = @transform_2, window_bounds = array<i64: 1, 128>}, {pipeline_mode = #tpu.pipeline_mode<synchronous>, transform_indices = @transform_3, window_bounds = array<i64: 128, 64>}, {pipeline_mode = #tpu.pipeline_mode<synchronous>, transform_indices = @transform_4, window_bounds = array<i64: 1, 64>}, {pipeline_mode = #tpu.pipeline_mode<synchronous>, transform_indices = @transform_5, window_bounds = array<i64: 64, 128>}, {pipeline_mode = #tpu.pipeline_mode<synchronous>, transform_indices = @transform_6, window_bounds = array<i64: 1, 128>}, {transform_indices = @transform_7, window_bounds = array<i64: 16, 128>}, {transform_indices = @transform_8, window_bounds = array<i64: 16, 64>}]} {
    %c0 = arith.constant 0 : index
    %c0_0 = arith.constant 0 : index
    %0 = vector.load %arg1[%c0, %c0_0] : memref<16x1024xf32, #tpu.memory_space<vmem>>, vector<16x1024xf32>
    %1 = arith.truncf %0 : vector<16x1024xf32> to vector<16x1024xbf16>
    %c0_1 = arith.constant 0 : index
    %c0_2 = arith.constant 0 : index
    %2 = vector.load %arg2[%c0_1, %c0_2] : memref<1024x128xbf16, #tpu.memory_space<vmem>>, vector<1024x128xbf16>
    %cst = arith.constant dense<0.000000e+00> : vector<16x128xf32>
    %3 = tpu.matmul %1, %2, %cst {dimension_numbers = #tpu.dot_dimension_numbers<[1], [0], [0], [1], [0, 0, 1, 1], [], []>} : vector<16x1024xbf16>, vector<1024x128xbf16>, vector<16x128xf32> -> vector<16x128xf32>
    %c0_3 = arith.constant 0 : index
    %c0_4 = arith.constant 0 : index
    %4 = vector.load %arg3[%c0_3, %c0_4] : memref<1x128xf32, #tpu.memory_space<vmem>>, vector<1x128xf32>
    %5 = vector.broadcast %4 : vector<1x128xf32> to vector<16x128xf32>
    %6 = arith.addf %3, %5 : vector<16x128xf32>
    %cst_5 = arith.constant 0.000000e+00 : f32
    %7 = vector.broadcast %cst_5 : f32 to vector<16x128xf32>
    %8 = arith.maximumf %6, %7 : vector<16x128xf32>
    %9 = arith.truncf %8 : vector<16x128xf32> to vector<16x128xbf16>
    %c0_6 = arith.constant 0 : index
    %c0_7 = arith.constant 0 : index
    %10 = vector.load %arg4[%c0_6, %c0_7] : memref<128x64xbf16, #tpu.memory_space<vmem>>, vector<128x64xbf16>
    %cst_8 = arith.constant dense<0.000000e+00> : vector<16x64xf32>
    %11 = tpu.matmul %9, %10, %cst_8 {dimension_numbers = #tpu.dot_dimension_numbers<[1], [0], [0], [1], [0, 0, 1, 1], [], []>} : vector<16x128xbf16>, vector<128x64xbf16>, vector<16x64xf32> -> vector<16x64xf32>
    %c0_9 = arith.constant 0 : index
    %c0_10 = arith.constant 0 : index
    %12 = vector.load %arg5[%c0_9, %c0_10] : memref<1x64xf32, #tpu.memory_space<vmem>>, vector<1x64xf32>
    %13 = vector.broadcast %12 : vector<1x64xf32> to vector<16x64xf32>
    %14 = arith.addf %11, %13 : vector<16x64xf32>
    %cst_11 = arith.constant 0.000000e+00 : f32
    %15 = vector.broadcast %cst_11 : f32 to vector<16x64xf32>
    %16 = arith.maximumf %14, %15 : vector<16x64xf32>
    %17 = arith.truncf %16 : vector<16x64xf32> to vector<16x64xbf16>
    %c0_12 = arith.constant 0 : index
    %c0_13 = arith.constant 0 : index
    %18 = vector.load %arg6[%c0_12, %c0_13] : memref<64x128xbf16, #tpu.memory_space<vmem>>, vector<64x128xbf16>
    %cst_14 = arith.constant dense<0.000000e+00> : vector<16x128xf32>
    %19 = tpu.matmul %17, %18, %cst_14 {dimension_numbers = #tpu.dot_dimension_numbers<[1], [0], [0], [1], [0, 0, 1, 1], [], []>} : vector<16x64xbf16>, vector<64x128xbf16>, vector<16x128xf32> -> vector<16x128xf32>
    %c0_15 = arith.constant 0 : index
    %c0_16 = arith.constant 0 : index
    %20 = vector.load %arg7[%c0_15, %c0_16] : memref<1x128xf32, #tpu.memory_space<vmem>>, vector<1x128xf32>
    %21 = vector.broadcast %20 : vector<1x128xf32> to vector<16x128xf32>
    %22 = arith.addf %19, %21 : vector<16x128xf32>
    %cst_17 = arith.constant dense<0xFF800000> : vector<16xf32>
    %23 = vector.multi_reduction <maximumf>, %22, %cst_17 [1] : vector<16x128xf32> to vector<16xf32>
    %24 = vector.shape_cast %23 : vector<16xf32> to vector<16x1xf32>
    %25 = vector.broadcast %24 : vector<16x1xf32> to vector<16x128xf32>
    %26 = arith.subf %22, %25 : vector<16x128xf32>
    %27 = math.exp %26 : vector<16x128xf32>
    %cst_18 = arith.constant 1.000000e+00 : f32
    %28 = vector.broadcast %cst_18 : f32 to vector<128x1xf32>
    %cst_19 = arith.constant dense<0.000000e+00> : vector<16x1xf32>
    %29 = tpu.matmul %27, %28, %cst_19 {dimension_numbers = #tpu.dot_dimension_numbers<[1], [0], [0], [1], [0, 0, 1, 1], [], []>} : vector<16x128xf32>, vector<128x1xf32>, vector<16x1xf32> -> vector<16x1xf32>
    %30 = tpu.reciprocal %29 : vector<16x1xf32> -> vector<16x1xf32>
    %31 = vector.broadcast %30 : vector<16x1xf32> to vector<16x128xf32>
    %32 = arith.mulf %27, %31 : vector<16x128xf32>
    %33 = arith.truncf %32 : vector<16x128xf32> to vector<16x128xbf16>
    %c0_20 = arith.constant 0 : index
    %c0_21 = arith.constant 0 : index
    %34 = vector.load %arg8[%c0_20, %c0_21] : memref<16x128xbf16, #tpu.memory_space<vmem>>, vector<16x128xbf16>
    tpu.vector_store %arg8[%c0_20, %c0_21], %33 {strides = array<i32>} : memref<16x128xbf16, #tpu.memory_space<vmem>>, vector<16x128xbf16>,
    %c0_22 = arith.constant 0 : index
    %c0_23 = arith.constant 0 : index
    %35 = vector.load %arg9[%c0_22, %c0_23] : memref<16x64xf32, #tpu.memory_space<vmem>>, vector<16x64xf32>
    tpu.vector_store %arg9[%c0_22, %c0_23], %16 {strides = array<i32>} : memref<16x64xf32, #tpu.memory_space<vmem>>, vector<16x64xf32>,
    return
  }
  func.func @transform_0(%arg0: i32) -> (i32, i32) {
    %c0_i32 = arith.constant 0 : i32
    %c0_i32_0 = arith.constant 0 : i32
    return %arg0, %c0_i32 : i32, i32
  }
  func.func @transform_1(%arg0: i32) -> (i32, i32) {
    %c0_i32 = arith.constant 0 : i32
    %c0_i32_0 = arith.constant 0 : i32
    %c0_i32_1 = arith.constant 0 : i32
    return %c0_i32, %c0_i32_0 : i32, i32
  }
  func.func @transform_2(%arg0: i32) -> (i32, i32) {
    %c0_i32 = arith.constant 0 : i32
    %c0_i32_0 = arith.constant 0 : i32
    %c0_i32_1 = arith.constant 0 : i32
    return %c0_i32, %c0_i32_0 : i32, i32
  }
  func.func @transform_3(%arg0: i32) -> (i32, i32) {
    %c0_i32 = arith.constant 0 : i32
    %c0_i32_0 = arith.constant 0 : i32
    %c0_i32_1 = arith.constant 0 : i32
    return %c0_i32, %c0_i32_0 : i32, i32
  }
  func.func @transform_4(%arg0: i32) -> (i32, i32) {
    %c0_i32 = arith.constant 0 : i32
    %c0_i32_0 = arith.constant 0 : i32
    %c0_i32_1 = arith.constant 0 : i32
    return %c0_i32, %c0_i32_0 : i32, i32
  }
  func.func @transform_5(%arg0: i32) -> (i32, i32) {
    %c0_i32 = arith.constant 0 : i32
    %c0_i32_0 = arith.constant 0 : i32
    %c0_i32_1 = arith.constant 0 : i32
    return %c0_i32, %c0_i32_0 : i32, i32
  }
  func.func @transform_6(%arg0: i32) -> (i32, i32) {
    %c0_i32 = arith.constant 0 : i32
    %c0_i32_0 = arith.constant 0 : i32
    %c0_i32_1 = arith.constant 0 : i32
    return %c0_i32, %c0_i32_0 : i32, i32
  }
  func.func @transform_7(%arg0: i32) -> (i32, i32) {
    %c0_i32 = arith.constant 0 : i32
    %c0_i32_0 = arith.constant 0 : i32
    return %arg0, %c0_i32 : i32, i32
  }
  func.func @transform_8(%arg0: i32) -> (i32, i32) {
    %c0_i32 = arith.constant 0 : i32
    %c0_i32_0 = arith.constant 0 : i32
    return %arg0, %c0_i32 : i32, i32
  }
}

</mosaic_0001>

<bundles_post_ra>
// kernel: classifier_forward.1
= control target key start
LH: loop header
LB: loop body
LE: loop exit
PB: predicated region body
PF: predicated region fallthrough
CT: control target
= control target key end

     0   :  { %vm1424_vm0 = vmmov 0   ;;  %vm893_vm1 = vcmask 523264   ;;  %s1780_s1 = inlined_call_operand.vmem [shape: bf16[1024,128], index: 1, kind: input, shape index: {}]   ;;  %s1781_s0 = inlined_call_operand.vmem [shape: f32[16,1024], index: 0, kind: input, shape index: {}]   ;;  %s1782_s3 = inlined_call_operand.vmem [shape: bf16[128,64], index: 3, kind: input, shape index: {}]   ;;  %s1783_s5 = inlined_call_operand.vmem [shape: bf16[64,128], index: 5, kind: input, shape index: {}]   ;;  %s1784_s2 = inlined_call_operand.vmem [shape: f32[1,128], index: 2, kind: input, shape index: {}]   ;;  %s1785_s4 = inlined_call_operand.vmem [shape: f32[1,64], index: 4, kind: input, shape index: {}]   ;;  %s1786_s8 = inlined_call_operand.vmem [shape: f32[16,64], index: 8, kind: output, shape index: {1}]   ;;  %s1787_s6 = inlined_call_operand.vmem [shape: f32[1,128], index: 6, kind: input, shape index: {}]   ;;  %s1788_s7 = inlined_call_operand.vmem [shape: bf16[16,128], index: 7, kind: output, shape index: {0}]  }
   0x1   :  { %v1339_v0 = vld [vmem:[%s1780_s1 + $0x78] sm:$0xff]   ;;  %v1343_v4 = vld [vmem:[%s1780_s1 + $0x70] sm:$0xff]   ;;  %v1347_v8 = vld [vmem:[%s1780_s1 + $0x68] sm:$0xff]  }
   0x2   :  { %v1340_v1 = vld [vmem:[%s1780_s1 + $0xf8] sm:$0xff]   ;;  %1146 = vmatprep.subr.bf16.mxu0 %v1339_v0  ;;  %v1344_v5 = vld [vmem:[%s1780_s1 + $0xf0] sm:$0xff]   ;;  %v1348_v9 = vld [vmem:[%s1780_s1 + $0xe8] sm:$0xff]  }
   0x3   :  { %v1341_v2 = vld [vmem:[%s1780_s1 + $0x38] sm:$0xff]   ;;  %1168 = vmatprep.subr.bf16.mxu1 %v1340_v1  ;;  %v1345_v6 = vld [vmem:[%s1780_s1 + $0x30] sm:$0xff]   ;;  %v1349_v10 = vld [vmem:[%s1780_s1 + $0x28] sm:$0xff]  }
   0x4   :  { %v1342_v3 = vld [vmem:[%s1780_s1 + $0xb8] sm:$0xff]   ;;  %1147 = vmatpush3.bf16.msra.mxu0 %v1341_v2  ;;  %v1346_v7 = vld [vmem:[%s1780_s1 + $0xb0] sm:$0xff]   ;;  %v1350_v11 = vld [vmem:[%s1780_s1 + $0xa8] sm:$0xff]  }
   0x5   :  { %1169 = vmatpush3.bf16.msra.mxu1 %v1342_v3  ;;  %1148 = vmatprep.subr.bf16.mxu0 %v1343_v4  ;;  %v1351_v12 = vld [vmem:[%s1780_s1 + $0x60] sm:$0xff]   ;;  %v1355_v16 = vld [vmem:[%s1780_s1 + $0x58] sm:$0xff]   ;;  %v1359_v20 = vld [vmem:[%s1780_s1 + $0x50] sm:$0xff]  }
   0x6   :  { %1170 = vmatprep.subr.bf16.mxu1 %v1344_v5  ;;  %v1352_v13 = vld [vmem:[%s1780_s1 + $0xe0] sm:$0xff]   ;;  %v1356_v17 = vld [vmem:[%s1780_s1 + $0xd8] sm:$0xff]   ;;  %v1360_v21 = vld [vmem:[%s1780_s1 + $0xd0] sm:$0xff]  }
   0x7   :  { %v1353_v14 = vld [vmem:[%s1780_s1 + $0x20] sm:$0xff]   ;;  %v1357_v18 = vld [vmem:[%s1780_s1 + $0x18] sm:$0xff]   ;;  %v1361_v22 = vld [vmem:[%s1780_s1 + $0x10] sm:$0xff]  }
   0x8   :  { %1149 = vmatpush3.bf16.msra.mxu0 %v1345_v6  ;;  %v1354_v15 = vld [vmem:[%s1780_s1 + $0xa0] sm:$0xff]   ;;  %v1358_v19 = vld [vmem:[%s1780_s1 + $0x98] sm:$0xff]   ;;  %v1362_v23 = vld [vmem:[%s1780_s1 + $0x90] sm:$0xff]  }
   0x9   :  { %1171 = vmatpush3.bf16.msra.mxu1 %v1346_v7  ;;  %1150 = vmatprep.subr.bf16.mxu0 %v1347_v8  ;;  %v1363_v24 = vld [vmem:[%s1780_s1 + $0x48] sm:$0xff]   ;;  %v1367_v28 = vld [vmem:[%s1780_s1 + $0x40] sm:$0xff]   ;;  %v32_v34 = vld [vmem:[%s1781_s0 + $0x18] sm:$0xff] }
   0xa   :  { %1172 = vmatprep.subr.bf16.mxu1 %v1348_v9  ;;  %v1364_v25 = vld [vmem:[%s1780_s1 + $0xc8] sm:$0xff]   ;;  %v1368_v29 = vld [vmem:[%s1780_s1 + $0xc0] sm:$0xff]   ;;  %v40_v36 = vld [vmem:[%s1781_s0 + $0x58] sm:$0xff] }
   0xb   :  { %v1365_v26 = vld [vmem:[%s1780_s1 + $0x8] sm:$0xff]   ;;  %v1369_v30 = vld [vmem:[%s1780_s1] sm:$0xff]   ;;  %v48_v39 = vpack.c.bf16 %v40_v36, %v32_v34  ;;  %v31_v41 = vld [vmem:[%s1781_s0 + $0x10] sm:$0xff] }
   0xc   :  { %1151 = vmatpush3.bf16.msra.mxu0 %v1349_v10  ;;  %v1366_v27 = vld [vmem:[%s1780_s1 + $0x88] sm:$0xff]   ;;  %v1370_v31 = vld [vmem:[%s1780_s1 + $0x80] sm:$0xff]   ;;  %v39_v42 = vld [vmem:[%s1781_s0 + $0x50] sm:$0xff] }
   0xd   :  { %1173 = vmatpush3.bf16.msra.mxu1 %v1350_v11  ;;  %1152 = vmatprep.subr.bf16.mxu0 %v1351_v12  ;;  %v30_v32 = vld [vmem:[%s1781_s0 + $0x8] sm:$0xff]  ;;  %v29_v37 = vld [vmem:[%s1781_s0] sm:$0xff]  ;;  %v47_v43 = vpack.c.bf16 %v39_v42, %v31_v41  ;;  %v1371_v44 = vld [vmem:[%s1780_s1 + $0x178] sm:$0xff]  }
   0xe   :  { %1174 = vmatprep.subr.bf16.mxu1 %v1352_v13  ;;  %v38_v33 = vld [vmem:[%s1781_s0 + $0x48] sm:$0xff]  ;;  %v37_v38 = vld [vmem:[%s1781_s0 + $0x40] sm:$0xff]  ;;  %645 = vmatprep.mubr.bf16.mxu1 %v48_v39  ;;  %v1372_v45 = vld [vmem:[%s1780_s1 + $0x1f8] sm:$0xff]  }
   0xf   :  { %v46_v35 = vpack.c.bf16 %v38_v33, %v30_v32  ;;  %v45_v40 = vpack.c.bf16 %v37_v38, %v29_v37  ;;  %v1373_v46 = vld [vmem:[%s1780_s1 + $0x138] sm:$0xff]   ;;  %v1375_v48 = vld [vmem:[%s1780_s1 + $0x170] sm:$0xff]   ;;  %v1379_v52 = vld [vmem:[%s1780_s1 + $0x168] sm:$0xff]  }
  0x10   :  { %1153 = vmatpush3.bf16.msra.mxu0 %v1353_v14  ;;  %v1374_v47 = vld [vmem:[%s1780_s1 + $0x1b8] sm:$0xff]   ;;  %v1376_v49 = vld [vmem:[%s1780_s1 + $0x1f0] sm:$0xff]   ;;  %v1380_v53 = vld [vmem:[%s1780_s1 + $0x1e8] sm:$0xff]  }
  0x11   :  { %1175 = vmatpush3.bf16.msra.mxu1 %v1354_v15  ;;  %1154 = vmatprep.subr.bf16.mxu0 %v1355_v16  ;;  %v1377_v50 = vld [vmem:[%s1780_s1 + $0x130] sm:$0xff]   ;;  %v1381_v54 = vld [vmem:[%s1780_s1 + $0x128] sm:$0xff]   ;;  %v1383_v56 = vld [vmem:[%s1780_s1 + $0x160] sm:$0xff]  }
  0x12   :  { %1176 = vmatprep.subr.bf16.mxu1 %v1356_v17  ;;  %604 = vmatprep.mubr.bf16.mxu0 %v46_v35  ;;  %v1378_v51 = vld [vmem:[%s1780_s1 + $0x1b0] sm:$0xff]   ;;  %v1382_v55 = vld [vmem:[%s1780_s1 + $0x1a8] sm:$0xff]   ;;  %v1384_v57 = vld [vmem:[%s1780_s1 + $0x1e0] sm:$0xff]  }
  0x13   :  { %v1385_v58 = vld [vmem:[%s1780_s1 + $0x120] sm:$0xff]   ;;  %v1387_v60 = vld [vmem:[%s1780_s1 + $0x158] sm:$0xff]   ;;  %v1391_v0 = vld [vmem:[%s1780_s1 + $0x150] sm:$0xff]  }
  0x14   :  { %1155 = vmatpush3.bf16.msra.mxu0 %v1357_v18  ;;  %v1386_v59 = vld [vmem:[%s1780_s1 + $0x1a0] sm:$0xff]   ;;  %v1388_v61 = vld [vmem:[%s1780_s1 + $0x1d8] sm:$0xff]   ;;  %v1392_v1 = vld [vmem:[%s1780_s1 + $0x1d0] sm:$0xff]  }
  0x15   :  { %1177 = vmatpush3.bf16.msra.mxu1 %v1358_v19  ;;  %1156 = vmatprep.subr.bf16.mxu0 %v1359_v20  ;;  %v1389_v62 = vld [vmem:[%s1780_s1 + $0x118] sm:$0xff]   ;;  %v1393_v2 = vld [vmem:[%s1780_s1 + $0x110] sm:$0xff]   ;;  %v1395_v4 = vld [vmem:[%s1780_s1 + $0x148] sm:$0xff]  }
  0x16   :  { %1178 = vmatprep.subr.bf16.mxu1 %v1360_v21  ;;  %v1390_v63 = vld [vmem:[%s1780_s1 + $0x198] sm:$0xff]   ;;  %v1394_v3 = vld [vmem:[%s1780_s1 + $0x190] sm:$0xff]   ;;  %v1396_v5 = vld [vmem:[%s1780_s1 + $0x1c8] sm:$0xff]  }
  0x17   :  { %v1397_v6 = vld [vmem:[%s1780_s1 + $0x108] sm:$0xff]   ;;  %v1399_v8 = vld [vmem:[%s1780_s1 + $0x140] sm:$0xff]   ;;  %v36_v14 = vld [vmem:[%s1781_s0 + $0x38] sm:$0xff] }
  0x18   :  { %1157 = vmatpush3.bf16.msra.mxu0 %v1361_v22  ;;  %v1398_v7 = vld [vmem:[%s1780_s1 + $0x188] sm:$0xff]   ;;  %v1400_v9 = vld [vmem:[%s1780_s1 + $0x1c0] sm:$0xff]   ;;  %v44_v15 = vld [vmem:[%s1781_s0 + $0x78] sm:$0xff] }
  0x19   :  { %1179 = vmatpush3.bf16.msra.mxu1 %v1362_v23  ;;  %1158 = vmatprep.subr.bf16.mxu0 %v1363_v24  ;;  %v1401_v10 = vld [vmem:[%s1780_s1 + $0x100] sm:$0xff]   ;;  %v34_v12 = vld [vmem:[%s1781_s0 + $0x28] sm:$0xff]  ;;  %v52_v17 = vpack.c.bf16 %v44_v15, %v36_v14  ;;  %v35_v20 = vld [vmem:[%s1781_s0 + $0x30] sm:$0xff]  ;;  %v1423_v24 = vmov 0.0  }
  0x1a   :  { %1180 = vmatprep.subr.bf16.mxu1 %v1364_v25  ;;  %v1402_v11 = vld [vmem:[%s1780_s1 + $0x180] sm:$0xff]   ;;  %v42_v13 = vld [vmem:[%s1781_s0 + $0x68] sm:$0xff]  ;;  %v43_v22 = vld [vmem:[%s1781_s0 + $0x70] sm:$0xff] }
  0x1b   :  { %v50_v16 = vpack.c.bf16 %v42_v13, %v34_v12  ;;  %v33_v18 = vld [vmem:[%s1781_s0 + $0x20] sm:$0xff]  ;;  %v51_v23 = vpack.c.bf16 %v43_v22, %v35_v20  ;;  %v1403_v25 = vld [vmem:[%s1782_s3 + $0x38] sm:$0xff]  }
  0x1c   :  { %1159 = vmatpush3.bf16.msra.mxu0 %v1365_v26  ;;  %v41_v19 = vld [vmem:[%s1781_s0 + $0x60] sm:$0xff]  ;;  %v1404_v26 = vld [vmem:[%s1782_s3 + $0x30] sm:$0xff]   ;;  %v1411_v33 = vld [vmem:[%s1783_s5 + $0x18] sm:$0xff]  }
  0x1d   :  { %1181 = vmatpush3.bf16.msra.mxu1 %v1366_v27  ;;  %1160 = vmatprep.subr.bf16.mxu0 %v1367_v28  ;;  %v49_v21 = vpack.c.bf16 %v41_v19, %v33_v18  ;;  %v1405_v27 = vld [vmem:[%s1782_s3 + $0x28] sm:$0xff]   ;;  %v1406_v28 = vld [vmem:[%s1782_s3 + $0x20] sm:$0xff]   ;;  %v1425_v19 = vmov 1.0  }
  0x1e   :  { %1182 = vmatprep.subr.bf16.mxu1 %v1368_v29  ;;  %v1407_v29 = vld [vmem:[%s1782_s3 + $0x18] sm:$0xff]   ;;  %v1410_v32 = vld [vmem:[%s1782_s3] sm:$0xff]  }
  0x1f   :  { %v1057_v41 = vld [vmem:[%s1784_s2] ss:$0 sm:$0xff] }
  0x20   :  { %1161 = vmatpush3.bf16.msra.mxu0 %v1369_v30  ;;  %v1408_v30 = vld [vmem:[%s1782_s3 + $0x10] sm:$0xff]   ;;  %v1131_v20 = vld [vmem:[%s1787_s6] ss:$0 sm:$0xff] }
  0x21   :  { %1183 = vmatpush3.bf16.msra.mxu1 %v1370_v31  ;;  %1190 = vmatprep.subr.bf16.mxu0 %v1371_v44  ;;  %v1409_v31 = vld [vmem:[%s1782_s3 + $0x8] sm:$0xff]  }
  0x22   :  { %1212 = vmatprep.subr.bf16.mxu1 %v1372_v45 }
  0x23   :  { %605 = vmatmul.mubr.bf16.vlgmr.msra.gmra.mxu0 %v45_v40 }
  0x24   :  { %646 = vmatmul.mubr.bf16.vlgmr.msra.gmra.mxu1 %v47_v43  ;;  %1191 = vmatpush3.bf16.msra.mxu0 %v1373_v46 }
  0x25   :  { %1213 = vmatpush3.bf16.msra.mxu1 %v1374_v47  ;;  %1192 = vmatprep.subr.bf16.mxu0 %v1375_v48 }
  0x26   :  { %1214 = vmatprep.subr.bf16.mxu1 %v1376_v49  ;;  %686 = vmatprep.mubr.bf16.mxu0 %v50_v16 }
  0x27   :  { %727 = vmatprep.mubr.bf16.mxu1 %v52_v17 }
  0x28   :  { %1193 = vmatpush3.bf16.msra.mxu0 %v1377_v50 }
  0x29   :  { %1215 = vmatpush3.bf16.msra.mxu1 %v1378_v51  ;;  %1194 = vmatprep.subr.bf16.mxu0 %v1379_v52 }
  0x2a   :  { %1216 = vmatprep.subr.bf16.mxu1 %v1380_v53 }
  0x2c   :  { %1195 = vmatpush3.bf16.msra.mxu0 %v1381_v54 }
  0x2d   :  { %1217 = vmatpush3.bf16.msra.mxu1 %v1382_v55  ;;  %1196 = vmatprep.subr.bf16.mxu0 %v1383_v56 }
  0x2e   :  { %1218 = vmatprep.subr.bf16.mxu1 %v1384_v57 }
  0x30   :  { %1197 = vmatpush3.bf16.msra.mxu0 %v1385_v58 }
  0x31   :  { %1219 = vmatpush3.bf16.msra.mxu1 %v1386_v59  ;;  %1198 = vmatprep.subr.bf16.mxu0 %v1387_v60 }
  0x32   :  { %1220 = vmatprep.subr.bf16.mxu1 %v1388_v61 }
  0x34   :  { %1199 = vmatpush3.bf16.msra.mxu0 %v1389_v62 }
  0x35   :  { %1221 = vmatpush3.bf16.msra.mxu1 %v1390_v63  ;;  %1200 = vmatprep.subr.bf16.mxu0 %v1391_v0 }
  0x36   :  { %1222 = vmatprep.subr.bf16.mxu1 %v1392_v1 }
  0x38   :  { %1201 = vmatpush3.bf16.msra.mxu0 %v1393_v2 }
  0x39   :  { %1223 = vmatpush3.bf16.msra.mxu1 %v1394_v3  ;;  %1202 = vmatprep.subr.bf16.mxu0 %v1395_v4 }
  0x3a   :  { %1224 = vmatprep.subr.bf16.mxu1 %v1396_v5 }
  0x3c   :  { %1203 = vmatpush3.bf16.msra.mxu0 %v1397_v6  ;;  %v1412_v6 = vld [vmem:[%s1783_s5 + $0x10] sm:$0xff]  }
  0x3d   :  { %1225 = vmatpush3.bf16.msra.mxu1 %v1398_v7  ;;  %1204 = vmatprep.subr.bf16.mxu0 %v1399_v8  ;;  %v1413_v7 = vld [vmem:[%s1783_s5 + $0x8] sm:$0xff]   ;;  %v1414_v8 = vld [vmem:[%s1783_s5] sm:$0xff]  }
  0x3e   :  { %1226 = vmatprep.subr.bf16.mxu1 %v1400_v9  ;;  %v1122_v9 = vld [vmem:[%s1785_s4] ss:$0 sm:$0xff] }
  0x40   :  { %1205 = vmatpush3.bf16.msra.mxu0 %v1401_v10 }
  0x41   :  { %1227 = vmatpush3.bf16.msra.mxu1 %v1402_v11  ;;  %1266 = vmatprep.subr.bf16.mxu0 %v1423_v24 }
  0x42   :  { %1286 = vmatprep.subr.bf16.mxu1 %v1423_v24 }
  0x43   :  { %687 = vmatmul.mubr.bf16.vlgmr.msra.gmra.mxu0 %v49_v21 }
  0x44   :  { %728 = vmatmul.mubr.bf16.vlgmr.msra.gmra.mxu1 %v51_v23  ;;  %1267 = vmatpush3.bf16.msra.mxu0 %v1403_v25 }
  0x45   :  { %1268 = vmatprep.subr.bf16.mxu0 %v1423_v24  ;;  %1282 = vmatprep.mubr.msk.bf16.mxu0 %vm1424_vm0, %v1423_v24 }
  0x46   :  { %1294 = vmatprep.mubr.msk.bf16.mxu1 %vm1424_vm0, %v1423_v24  ;;  %1287 = vmatpush3.bf16.msra.mxu1 %v1411_v33 }
  0x47   :  { %1288 = vmatprep.subr.bf16.mxu1 %v1423_v24 }
  0x48   :  { %1269 = vmatpush3.bf16.msra.mxu0 %v1404_v26 }
  0x49   :  { %1270 = vmatprep.subr.bf16.mxu0 %v1423_v24 }
  0x4a   :  { %1289 = vmatpush3.bf16.msra.mxu1 %v1412_v6 }
  0x4b   :  { %1290 = vmatprep.subr.bf16.mxu1 %v1423_v24 }
  0x4c   :  { %1271 = vmatpush3.bf16.msra.mxu0 %v1405_v27 }
  0x4d   :  { %1272 = vmatprep.subr.bf16.mxu0 %v1423_v24 }
  0x4e   :  { %1291 = vmatpush3.bf16.msra.mxu1 %v1413_v7 }
  0x4f   :  { %1292 = vmatprep.subr.bf16.mxu1 %v1423_v24 }
  0x50   :  { %1273 = vmatpush3.bf16.msra.mxu0 %v1406_v28 }
  0x51   :  { %1274 = vmatprep.subr.bf16.mxu0 %v1423_v24 }
  0x52   :  { %1293 = vmatpush3.bf16.msra.mxu1 %v1414_v8 }
  0x53   :  { %1298 = vmatprep.subr.mxu1 %v1425_v19 }
  0x54   :  { %1275 = vmatpush3.bf16.msra.mxu0 %v1407_v29 }
  0x55   :  { %1276 = vmatprep.subr.bf16.mxu0 %v1423_v24 }
  0x58   :  { %1277 = vmatpush3.bf16.msra.mxu0 %v1408_v30 }
  0x59   :  { %1278 = vmatprep.subr.bf16.mxu0 %v1423_v24 }
  0x5c   :  { %1279 = vmatpush3.bf16.msra.mxu0 %v1409_v31 }
  0x5d   :  { %1280 = vmatprep.subr.bf16.mxu0 %v1423_v24 }
  0x60   :  { %1281 = vmatpush3.bf16.msra.mxu0 %v1410_v32 }
  0xe3   :  { %v1162_v34 = vpop.f32.mrf.mxu0 }
  0xe4   :  { %v1184_v35 = vpop.f32.mrf.mxu1 }
  0xe5   :  { %v1163_v36 = vpop.f32.mrf.mxu0 }
  0xe6   :  { %v1185_v37 = vpop.f32.mrf.mxu1  ;;  %v1164_v39 = vadd.f32 %v1163_v36, %v1162_v34 }
  0xe7   :  { %v1165_v38 = vpop.f32.mrf.mxu0  ;;  %v1186_v44 = vadd.f32 %v1185_v37, %v1184_v35  ;;  %v1426_v35 = vmov 0  }
  0xe8   :  { %v1187_v40 = vpop.f32.mrf.mxu1  ;;  %v607_v43 = vadd.f32 %v1164_v39, %v1057_v41  ;;  %1337 = vset.pattern.permute.xlu1 %v1426_v35  ;;  %1338 = vset.pattern.permute.xlu0 %v1426_v35 }
  0xe9   :  { %v1166_v42 = vpop.f32.mrf.mxu0 }
  0xea   :  { %v1167_v45 = vadd.f32 %v1166_v42, %v1165_v38  ;;  %v1188_v46 = vpop.f32.mrf.mxu1  ;;  %v648_v50 = vadd.f32 %v1186_v44, %v607_v43 }
  0xeb   :  { %v1189_v55 = vadd.f32 %v1188_v46, %v1187_v40 }
  0xec   :  { %v610_v51 = vadd.f32 %v1167_v45, %v1057_v41 }
  0xee   :  { %v651_v59 = vadd.f32 %v1189_v55, %v610_v51 }
 0x103   :  { %v1206_v47 = vpop.f32.mrf.mxu0 }
 0x104   :  { %v1228_v48 = vpop.f32.mrf.mxu1 }
 0x105   :  { %v1207_v49 = vpop.f32.mrf.mxu0 }
 0x106   :  { %v1208_v52 = vadd.f32 %v1207_v49, %v1206_v47  ;;  %v1229_v53 = vpop.f32.mrf.mxu1 }
 0x107   :  { %v1209_v54 = vpop.f32.mrf.mxu0  ;;  %v1230_v60 = vadd.f32 %v1229_v53, %v1228_v48 }
 0x108   :  { %v689_v56 = vadd.f32 %v1208_v52, %v648_v50  ;;  %v1231_v57 = vpop.f32.mrf.mxu1 }
 0x109   :  { %v1210_v58 = vpop.f32.mrf.mxu0 }
 0x10a   :  { %v1211_v61 = vadd.f32 %v1210_v58, %v1209_v54  ;;  %v1232_v62 = vpop.f32.mrf.mxu1  ;;  %v730_v63 = vadd.f32 %v1230_v60, %v689_v56 }
 0x10b   :  { %v1233_v1 = vadd.f32 %v1232_v62, %v1231_v57 }
 0x10c   :  { %v692_v0 = vadd.f32 %v1211_v61, %v651_v59  ;;  %v736_v3 = vmax.f32 %v730_v63, 0.0 }
 0x10e   :  { %v733_v2 = vadd.f32 %v1233_v1, %v692_v0 }
 0x110   :  { %v737_v4 = vmax.f32 %v733_v2, 0.0 }
 0x112   :  { %v738_v5 = vpack.c.bf16 %v737_v4, %v736_v3 }
 0x114   :  { %1283 = vmatmul.mubr.bf16.vlgmr.msra.gmra.mxu0 %v738_v5 }
 0x1d4   :  { %v844_v10 = vpop.f32.mrf.mxu0 }
 0x1d5   :  { %v845_v11 = vadd.f32 %v1122_v9, %v844_v10 }
 0x1d6   :  { %v1284_v12 = vpop.f32.mrf.mxu0 }
 0x1d7   :  { %v851_v13 = vmax.f32 %v845_v11, 0.0 }
 0x1d8   :  { %v847_v14 = vpop.f32.mrf.mxu0 }
 0x1d9   :  { %1047 = vst.msk [vmem:[%s1786_s8] sm:$0xff] %vm893_vm1, %v851_v13  ;;  %v848_v15 = vadd.f32 %v1122_v9, %v847_v14 }
 0x1da   :  { %v1285_v16 = vpop.f32.mrf.mxu0 }
 0x1db   :  { %v852_v17 = vmax.f32 %v848_v15, 0.0 }
 0x1dd   :  { %v853_v18 = vpack.c.bf16 %v852_v17, %v851_v13  ;;  %1048 = vst.msk [vmem:[%s1786_s8 + $0x8] sm:$0xff] %vm893_vm1, %v852_v17 }
 0x1df   :  { %1295 = vmatmul.mubr.msk.bf16.vlgmr.msra.gmra.mxu1 %vm893_vm1, %v853_v18 }
 0x1e0   :  { %1299 = vmatpush3.msra.mxu1 %v1425_v19 }
 0x1e1   :  { %1300 = vmatprep.subr.mxu1 %v1425_v19 }
 0x1e2   :  { %1301 = vmatpush3.msra.mxu1 %v1425_v19 }
 0x1e3   :  { %1302 = vmatprep.subr.mxu1 %v1425_v19 }
 0x1e4   :  { %1303 = vmatpush3.msra.mxu1 %v1425_v19 }
 0x1e5   :  { %1304 = vmatprep.subr.mxu1 %v1425_v19 }
 0x1e6   :  { %1305 = vmatpush3.msra.mxu1 %v1425_v19 }
 0x1e7   :  { %1306 = vmatprep.subr.mxu1 %v1425_v19 }
 0x1e8   :  { %1307 = vmatpush3.msra.mxu1 %v1425_v19 }
 0x1e9   :  { %1308 = vmatprep.subr.mxu1 %v1425_v19 }
 0x1ea   :  { %1309 = vmatpush3.msra.mxu1 %v1425_v19 }
 0x1eb   :  { %1310 = vmatprep.subr.mxu1 %v1425_v19 }
 0x1ec   :  { %1311 = vmatpush3.msra.mxu1 %v1425_v19 }
 0x1ed   :  { %1312 = vmatprep.subr.mxu1 %v1425_v19 }
 0x1ee   :  { %1313 = vmatpush3.msra.mxu1 %v1425_v19 }
 0x1ef   :  { %1314 = vmatprep.subr.mxu1 %v1425_v19 }
 0x1f0   :  { %1315 = vmatpush3.msra.mxu1 %v1425_v19 }
 0x1f1   :  { %1316 = vmatprep.subr.mxu1 %v1425_v19 }
 0x1f2   :  { %1317 = vmatpush3.msra.mxu1 %v1425_v19 }
 0x1f3   :  { %1318 = vmatprep.subr.mxu1 %v1425_v19 }
 0x1f4   :  { %1319 = vmatpush3.msra.mxu1 %v1425_v19 }
 0x1f5   :  { %1320 = vmatprep.subr.mxu1 %v1425_v19 }
 0x1f6   :  { %1321 = vmatpush3.msra.mxu1 %v1425_v19 }
 0x1f7   :  { %1322 = vmatprep.subr.mxu1 %v1425_v19 }
 0x1f8   :  { %1323 = vmatpush3.msra.mxu1 %v1425_v19 }
 0x1f9   :  { %1324 = vmatprep.subr.mxu1 %v1425_v19 }
 0x1fa   :  { %1325 = vmatpush3.msra.mxu1 %v1425_v19 }
 0x1fb   :  { %1326 = vmatprep.subr.mxu1 %v1425_v19 }
 0x1fc   :  { %1327 = vmatpush3.msra.mxu1 %v1425_v19 }
 0x1fd   :  { %1328 = vmatprep.subr.mxu1 %v1425_v19 }
 0x1fe   :  { %1329 = vmatpush3.msra.mxu1 %v1425_v19 }
 0x29f   :  { %v931_v21 = vpop.f32.mrf.mxu1 }
 0x2a0   :  { %v932_v22 = vadd.f32 %v1131_v20, %v931_v21 }
 0x2a1   :  { %v1296_v23 = vpop.f32.mrf.mxu1 }
 0x2a2   :  { %938 = vmax.xlane.f32.xlu0 %v932_v22 }
 0x2a3   :  { %v934_v24 = vpop.f32.mrf.mxu1 }
 0x2a4   :  { %v935_v25 = vadd.f32 %v1131_v20, %v934_v24 }
 0x2a5   :  { %v1297_v26 = vpop.f32.mrf.mxu1 }
 0x2a6   :  { %940 = vmax.xlane.f32.xlu0 %v935_v25 }
 0x32b   :  { %v939_v27 = vpop.xlane.xlu0 %938 }
 0x32c   :  { %v942_v28 = vsub.f32 %v932_v22, %v939_v27 }
 0x32e   :  { %v944_v29 = vmul.f32 1.442695, %v942_v28 }
 0x32f   :  { %v941_v30 = vpop.xlane.xlu0 %940 }
 0x330   :  { %1415 = vpow2.f32 %v944_v29  ;;  %v943_v31 = vsub.f32 %v935_v25, %v941_v30 }
 0x332   :  { %v946_v32 = vmul.f32 1.442695, %v943_v31 }
 0x334   :  { %1417 = vpow2.f32 %v946_v32 }
 0x33d   :  { %v1416_v33 = vpop.eup %1415 }
 0x33e   :  { %1330 = vmatprep.mubr.f32.mxu1 %v1416_v33 }
 0x341   :  { %v1418_v34 = vpop.eup %1417 }
 0x342   :  { %1331 = vmatmul.mubr.f32.vlgmr.msra.gmra.mxu1 %v1418_v34 }
 0x402   :  { %v1332_v36 = vpop.f32.mrf.mxu1 }
 0x404   :  { %v1014_v37 = vpop.f32.mrf.mxu1 }
 0x405   :  { %1419 = vrcp.f32 %v1014_v37 }
 0x406   :  { %1421 = vrcp.f32 %v1332_v36 }
 0x412   :  { %v1420_v38 = vpop.eup %1419 }
 0x413   :  { %1027 = vperm.xlu1 %1337, %v1420_v38   ;;  %v1422_v39 = vpop.eup %1421 }
 0x417   :  { %1032 = vperm.xlu1 %1337, %v1422_v39  }
 0x48e   :  { %v1028_v40 = vpop.permute.xlu1 %1027 }
 0x48f   :  { %v1035_v42 = vmul.f32 %v1416_v33, %v1028_v40 }
 0x492   :  { %v1033_v41 = vpop.permute.xlu1 %1032 }
 0x493   :  { %v1036_v43 = vmul.f32 %v1418_v34, %v1033_v41 }
 0x495   :  { %v1144_v44 = vpack.c.bf16 %v1036_v43, %v1035_v42 }
 0x497   :  { %1145 = vst [vmem:[%s1788_s7] sm:$0xff] %v1144_v44  }

</bundles_post_ra>
